<compile_context>
chip_gen: v7x
topology: tpu7x:2x2x1
jax: 0.10.0
libtpu: 0.0.40
codegen_flags: <defaults>
</compile_context>

<pallas_src>
import functools
import math

import jax
import jax.numpy as jnp
from jax import lax
from jax.experimental import pallas as pl
from jax.experimental.pallas import tpu as pltpu


def _softplus(x):
    # Numerically stable softplus == log(1 + exp(x)); matches the module's
    # torch.log(1 + torch.exp(x)) everywhere it does not overflow.
    return jnp.maximum(x, 0.0) + jnp.log(1.0 + jnp.exp(-jnp.abs(x)))


def _cmv_linear_kernel(x_ref, wm_ref, wsp_ref, wn_ref,
                       bm_ref, bsp_ref, bn_ref,
                       o_ref, acc_ref, *cache_refs, cache_weights):
    # grid = (n_tiles, m_tiles, k_tiles) -> program ids (j, i, k)
    i = pl.program_id(1)          # batch (M) tile index
    k = pl.program_id(2)          # reduction (K) tile index
    nk = pl.num_programs(2)

    @pl.when(k == 0)
    def _():
        acc_ref[...] = jnp.zeros_like(acc_ref)

    if cache_weights:
        # Sample the (tn, tk) weight tile once (first M tile) and cache it in
        # VMEM; reuse it for all later M tiles of the same N strip.
        wcache_ref = cache_refs[0]

        @pl.when(i == 0)
        def _():
            wcache_ref[k] = wm_ref[...] + _softplus(wsp_ref[...]) * wn_ref[...]

        w = wcache_ref[k]
    else:
        w = wm_ref[...] + _softplus(wsp_ref[...]) * wn_ref[...]

    # x:(tm, tk) . w:(tn, tk), contracting the last dims -> (tm, tn).
    # Feeds the MXU without materializing w.T (no XLU relayout).
    acc_ref[...] += lax.dot_general(
        x_ref[...], w,
        dimension_numbers=(((1,), (1,)), ((), ())),
        preferred_element_type=jnp.float32)

    @pl.when(k == nk - 1)
    def _():
        # Bias is sampled/added once per output tile, on the final K step.
        b = bm_ref[...] + _softplus(bsp_ref[...]) * bn_ref[...]   # (1, tn)
        o_ref[...] = (acc_ref[...] + b).astype(o_ref.dtype)


def _round_up(x, m):
    return (x + m - 1) // m * m


def _pick_tk(in_f):
    """Largest K tile in {512, 384, 256, 128} that evenly divides the 128-aligned K."""
    k_aligned = _round_up(in_f, 128)
    for cand in (512, 384, 256, 128):
        if k_aligned % cand == 0:
            return min(cand, k_aligned)
    return 128


def cmv_bayes_linear_forward(x, weight_mean, weight_std_param, weight_noise,
                             bias_mean, bias_std_param, bias_noise):
    """x: (..., in_f); weight params/noise: (out_f, in_f); bias params/noise: (out_f,) or None."""
    out_f, in_f = weight_mean.shape
    dtype = x.dtype

    lead_shape = x.shape[:-1]
    x2d = x.reshape(-1, in_f)
    B = x2d.shape[0]

    # bias=False path of the module: identical to adding a zero bias.
    if bias_mean is None:
        bias_mean = jnp.zeros((out_f,), dtype)
        bias_std_param = jnp.full((out_f,), -30.0, dtype)   # softplus ~ 0
        bias_noise = jnp.zeros((out_f,), dtype)

    # ---- tile selection: lane-dense last dims, sublane-aligned rows --------
    tm = min(128, _round_up(B, 8))                       # batch tile (x8 sublanes)
    tn = 256 if _round_up(out_f, 128) >= 256 else 128    # lane-dense output tile
    tk = _pick_tk(in_f)                                  # reduction tile (x128)

    M = _round_up(B, tm)
    N = _round_up(out_f, tn)
    K = _round_up(in_f, tk)
    mt, nt, kt = M // tm, N // tn, K // tk

    # Zero padding: padded mean=0 and noise=0 => padded weights/bias sample to
    # exactly 0, padded x rows/cols are 0 => padded region contributes nothing.
    xp = jnp.pad(x2d, ((0, M - B), (0, K - in_f)))
    wm = jnp.pad(weight_mean, ((0, N - out_f), (0, K - in_f)))
    wsp = jnp.pad(weight_std_param, ((0, N - out_f), (0, K - in_f)))
    wn = jnp.pad(weight_noise, ((0, N - out_f), (0, K - in_f)))
    bm = jnp.pad(bias_mean.reshape(1, out_f), ((0, 0), (0, N - out_f)))
    bsp = jnp.pad(bias_std_param.reshape(1, out_f), ((0, 0), (0, N - out_f)))
    bn = jnp.pad(bias_noise.reshape(1, out_f), ((0, 0), (0, N - out_f)))

    # Only cache the sampled weights when there is more than one batch tile and
    # the per-N-strip cache stays comfortably small (VMEM-safe on v7x too).
    cache_weights = (mt > 1) and (kt * tn * tk * 4 <= 16 * 1024 * 1024)
    scratch = [pltpu.VMEM((tm, tn), jnp.float32)]
    if cache_weights:
        scratch.append(pltpu.VMEM((kt, tn, tk), jnp.float32))

    if cache_weights:
        # For i > 0 the kernel reads only the VMEM cache, so collapse the
        # weight-stream block index to the last block of the previous M tile:
        # consecutive grid steps keep the same block index and Pallas skips
        # the HBM->VMEM re-fetches of mean/std/noise for later batch tiles.
        def w_idx(j, i, k):
            return (j, jnp.where(i == 0, k, kt - 1))
        # Sequential M iteration is required so i==0 fills the cache before
        # i>0 reads it on the same core -> M axis must stay "arbitrary".
        dim_sem = ("parallel", "arbitrary", "arbitrary")
    else:
        def w_idx(j, i, k):
            return (j, k)
        dim_sem = ("parallel", "parallel", "arbitrary")

    out = pl.pallas_call(
        functools.partial(_cmv_linear_kernel, cache_weights=cache_weights),
        out_shape=jax.ShapeDtypeStruct((M, N), dtype),
        grid_spec=pltpu.PrefetchScalarGridSpec(
            num_scalar_prefetch=0,
            # N outermost so the cached sampled-weight strip stays valid while
            # the M tiles iterate; K innermost for the resident accumulator.
            grid=(nt, mt, kt),
            in_specs=[
                pl.BlockSpec((tm, tk), lambda j, i, k: (i, k)),   # x
                pl.BlockSpec((tn, tk), w_idx),                    # weight_mean
                pl.BlockSpec((tn, tk), w_idx),                    # _weight_std_param
                pl.BlockSpec((tn, tk), w_idx),                    # weight noise
                pl.BlockSpec((1, tn), lambda j, i, k: (0, j)),    # bias_mean
                pl.BlockSpec((1, tn), lambda j, i, k: (0, j)),    # _bias_std_param
                pl.BlockSpec((1, tn), lambda j, i, k: (0, j)),    # bias noise
            ],
            out_specs=pl.BlockSpec((tm, tn), lambda j, i, k: (i, j)),
            scratch_shapes=scratch,
        ),
        compiler_params=pltpu.CompilerParams(
            dimension_semantics=dim_sem,
            # Modest limit: > v5e's 16 MiB scoped default, comfortably under
            # v7x's 64 MiB physical VMEM.  Actual live footprint is a few MiB.
            vmem_limit_bytes=48 * 1024 * 1024),
    )(xp, wm, wsp, wn, bm, bsp, bn)

    return out[:B, :out_f].reshape(*lead_shape, out_f)


def init_cmv_bayes_linear_params(key, in_features, out_features, init_std=0.05,
                                 dtype=jnp.float32):
    """Deterministic re-implementation of CMVBayesLinear.reset_parameters."""
    k_w, k_b = jax.random.split(key, 2)
    bound = 1.0 / math.sqrt(in_features)
    weight_mean = jax.random.uniform(
        k_w, (out_features, in_features), dtype, minval=-bound, maxval=bound)
    bias_mean = jax.random.uniform(
        k_b, (out_features,), dtype, minval=-bound, maxval=bound)
    std_init = math.log(math.exp(init_std) - 1.0)   # inverse-softplus(init_std)
    weight_std_param = jnp.full((out_features, in_features), std_init, dtype)
    bias_std_param = jnp.full((out_features,), std_init, dtype)
    return weight_mean, weight_std_param, bias_mean, bias_std_param


def reference_forward(x, wm, wsp, wn, bm, bsp, bn):
    w = wm + _softplus(wsp) * wn
    b = bm + _softplus(bsp) * bn
    y = jnp.dot(x, w.T, precision=lax.Precision.HIGHEST,
                preferred_element_type=jnp.float32).astype(x.dtype)
    return y + b


if __name__ == "__main__":
    def run_case(key, batch_shape, in_f, out_f):
        k_params, k_x, k_wn, k_bn = jax.random.split(key, 4)
        wm, wsp, bm, bsp = init_cmv_bayes_linear_params(k_params, in_f, out_f)
        x = jax.random.normal(k_x, (*batch_shape, in_f), jnp.float32)
        # Reparameterization noise (torch.randn_like equivalent), drawn deterministically.
        wn = jax.random.normal(k_wn, (out_f, in_f), jnp.float32)
        bn = jax.random.normal(k_bn, (out_f,), jnp.float32)

        out = jax.block_until_ready(
            cmv_bayes_linear_forward(x, wm, wsp, wn, bm, bsp, bn))
        ref = reference_forward(x, wm, wsp, wn, bm, bsp, bn)
        assert out.shape == (*batch_shape, out_f)
        assert jnp.allclose(out, ref, atol=1e-3, rtol=1e-3), \
            f"mismatch vs reference at shape ({batch_shape},{in_f},{out_f})"

    key = jax.random.PRNGKey(0)
    k1, k2, k3 = jax.random.split(key, 3)

    # Small shape consistent with a linear layer (single-tile fast path).
    run_case(k1, batch_shape=(8,), in_f=32, out_f=32)
    # Ragged multi-tile shape: exercises M/N/K tiling, K accumulation, zero
    # padding, the sampled-weight VMEM cache across batch tiles, and the
    # DMA-skipping weight index map.
    run_case(k2, batch_shape=(160,), in_f=640, out_f=176)
    # Leading batch dims (F.linear semantics) + odd out_features padding.
    run_case(k3, batch_shape=(2, 5), in_f=32, out_f=48)

    print("KERNEL_OK")
</pallas_src>

<mosaic_0001>
module attributes {stable_mosaic.version = 11 : i64} {
  func.func @_cmv_linear_kernel(%arg0: i32, %arg1: i32, %arg2: i32, %arg3: memref<8x128xf32, #tpu.memory_space<vmem>>, %arg4: memref<128x128xf32, #tpu.memory_space<vmem>>, %arg5: memref<128x128xf32, #tpu.memory_space<vmem>>, %arg6: memref<128x128xf32, #tpu.memory_space<vmem>>, %arg7: memref<1x128xf32, #tpu.memory_space<vmem>>, %arg8: memref<1x128xf32, #tpu.memory_space<vmem>>, %arg9: memref<1x128xf32, #tpu.memory_space<vmem>>, %arg10: memref<8x128xf32, #tpu.memory_space<vmem>>, %arg11: memref<8x128xf32, #tpu.memory_space<vmem>>) attributes {dimension_semantics = [#tpu.dimension_semantics<parallel>, #tpu.dimension_semantics<parallel>, #tpu.dimension_semantics<arbitrary>], iteration_bounds = array<i64: 1, 1, 1>, scalar_prefetch = 0 : i64, scratch_operands = 1 : i64, tpu.core_type = #tpu.core_type<tc>, window_params = [{transform_indices = @transform_0, window_bounds = array<i64: 8, 128>}, {transform_indices = @transform_1, window_bounds = array<i64: 128, 128>}, {transform_indices = @transform_2, window_bounds = array<i64: 128, 128>}, {transform_indices = @transform_3, window_bounds = array<i64: 128, 128>}, {transform_indices = @transform_4, window_bounds = array<i64: 1, 128>}, {transform_indices = @transform_5, window_bounds = array<i64: 1, 128>}, {transform_indices = @transform_6, window_bounds = array<i64: 1, 128>}, {transform_indices = @transform_7, window_bounds = array<i64: 8, 128>}]} {
    %c0_i32 = arith.constant 0 : i32
    %0 = arith.cmpi eq, %arg2, %c0_i32 : i32
    %1 = arith.extui %0 : i1 to i32
    %c0_i32_0 = arith.constant 0 : i32
    %2 = arith.cmpi ne, %1, %c0_i32_0 : i32
    scf.if %2 {
      %cst_17 = arith.constant 0.000000e+00 : f32
      %26 = vector.broadcast %cst_17 : f32 to vector<8x128xf32>
      %c0_18 = arith.constant 0 : index
      %c0_19 = arith.constant 0 : index
      %27 = vector.load %arg11[%c0_18, %c0_19] : memref<8x128xf32, #tpu.memory_space<vmem>>, vector<8x128xf32>
      tpu.vector_store %arg11[%c0_18, %c0_19], %26 {strides = array<i32>} : memref<8x128xf32, #tpu.memory_space<vmem>>, vector<8x128xf32>,
    } else {
    }
    %c0 = arith.constant 0 : index
    %c0_1 = arith.constant 0 : index
    %3 = vector.load %arg4[%c0, %c0_1] : memref<128x128xf32, #tpu.memory_space<vmem>>, vector<128x128xf32>
    %c0_2 = arith.constant 0 : index
    %c0_3 = arith.constant 0 : index
    %4 = vector.load %arg5[%c0_2, %c0_3] : memref<128x128xf32, #tpu.memory_space<vmem>>, vector<128x128xf32>
    %cst = arith.constant 0.000000e+00 : f32
    %5 = vector.broadcast %cst : f32 to vector<128x128xf32>
    %6 = arith.maximumf %4, %5 : vector<128x128xf32>
    %7 = math.absf %4 : vector<128x128xf32>
    %cst_4 = arith.constant 0.000000e+00 : f32
    %8 = vector.broadcast %cst_4 : f32 to vector<128x128xf32>
    %9 = arith.subf %8, %7 : vector<128x128xf32>
    %10 = math.exp %9 : vector<128x128xf32>
    %cst_5 = arith.constant 1.000000e+00 : f32
    %11 = vector.broadcast %cst_5 : f32 to vector<128x128xf32>
    %12 = arith.addf %11, %10 : vector<128x128xf32>
    %13 = math.log %12 : vector<128x128xf32>
    %14 = arith.addf %6, %13 : vector<128x128xf32>
    %c0_6 = arith.constant 0 : index
    %c0_7 = arith.constant 0 : index
    %15 = vector.load %arg6[%c0_6, %c0_7] : memref<128x128xf32, #tpu.memory_space<vmem>>, vector<128x128xf32>
    %16 = arith.mulf %14, %15 : vector<128x128xf32>
    %17 = arith.addf %3, %16 : vector<128x128xf32>
    %c0_8 = arith.constant 0 : index
    %c0_9 = arith.constant 0 : index
    %18 = vector.load %arg11[%c0_8, %c0_9] : memref<8x128xf32, #tpu.memory_space<vmem>>, vector<8x128xf32>
    %c0_10 = arith.constant 0 : index
    %c0_11 = arith.constant 0 : index
    %19 = vector.load %arg3[%c0_10, %c0_11] : memref<8x128xf32, #tpu.memory_space<vmem>>, vector<8x128xf32>
    %cst_12 = arith.constant dense<0.000000e+00> : vector<8x128xf32>
    %20 = tpu.matmul %19, %17, %cst_12 {dimension_numbers = #tpu.dot_dimension_numbers<[1], [1], [0], [0], [0, 0, 1, 0], [], []>} : vector<8x128xf32>, vector<128x128xf32>, vector<8x128xf32> -> vector<8x128xf32>
    %21 = arith.addf %18, %20 : vector<8x128xf32>
    %c0_13 = arith.constant 0 : index
    %c0_14 = arith.constant 0 : index
    %22 = vector.load %arg11[%c0_13, %c0_14] : memref<8x128xf32, #tpu.memory_space<vmem>>, vector<8x128xf32>
    tpu.vector_store %arg11[%c0_13, %c0_14], %21 {strides = array<i32>} : memref<8x128xf32, #tpu.memory_space<vmem>>, vector<8x128xf32>,
    %c0_i32_15 = arith.constant 0 : i32
    %23 = arith.cmpi eq, %arg2, %c0_i32_15 : i32
    %24 = arith.extui %23 : i1 to i32
    %c0_i32_16 = arith.constant 0 : i32
    %25 = arith.cmpi ne, %24, %c0_i32_16 : i32
    scf.if %25 {
      %c0_17 = arith.constant 0 : index
      %c0_18 = arith.constant 0 : index
      %26 = vector.load %arg7[%c0_17, %c0_18] : memref<1x128xf32, #tpu.memory_space<vmem>>, vector<1x128xf32>
      %c0_19 = arith.constant 0 : index
      %c0_20 = arith.constant 0 : index
      %27 = vector.load %arg8[%c0_19, %c0_20] : memref<1x128xf32, #tpu.memory_space<vmem>>, vector<1x128xf32>
      %cst_21 = arith.constant 0.000000e+00 : f32
      %28 = vector.broadcast %cst_21 : f32 to vector<1x128xf32>
      %29 = arith.maximumf %27, %28 : vector<1x128xf32>
      %30 = math.absf %27 : vector<1x128xf32>
      %cst_22 = arith.constant 0.000000e+00 : f32
      %31 = vector.broadcast %cst_22 : f32 to vector<1x128xf32>
      %32 = arith.subf %31, %30 : vector<1x128xf32>
      %33 = math.exp %32 : vector<1x128xf32>
      %cst_23 = arith.constant 1.000000e+00 : f32
      %34 = vector.broadcast %cst_23 : f32 to vector<1x128xf32>
      %35 = arith.addf %34, %33 : vector<1x128xf32>
      %36 = math.log %35 : vector<1x128xf32>
      %37 = arith.addf %29, %36 : vector<1x128xf32>
      %c0_24 = arith.constant 0 : index
      %c0_25 = arith.constant 0 : index
      %38 = vector.load %arg9[%c0_24, %c0_25] : memref<1x128xf32, #tpu.memory_space<vmem>>, vector<1x128xf32>
      %39 = arith.mulf %37, %38 : vector<1x128xf32>
      %40 = arith.addf %26, %39 : vector<1x128xf32>
      %c0_26 = arith.constant 0 : index
      %c0_27 = arith.constant 0 : index
      %41 = vector.load %arg11[%c0_26, %c0_27] : memref<8x128xf32, #tpu.memory_space<vmem>>, vector<8x128xf32>
      %42 = vector.broadcast %40 : vector<1x128xf32> to vector<8x128xf32>
      %43 = arith.addf %41, %42 : vector<8x128xf32>
      %c0_28 = arith.constant 0 : index
      %c0_29 = arith.constant 0 : index
      %44 = vector.load %arg10[%c0_28, %c0_29] : memref<8x128xf32, #tpu.memory_space<vmem>>, vector<8x128xf32>
      tpu.vector_store %arg10[%c0_28, %c0_29], %43 {strides = array<i32>} : memref<8x128xf32, #tpu.memory_space<vmem>>, vector<8x128xf32>,
    } else {
    }
    return
  }
  func.func @transform_0(%arg0: i32, %arg1: i32, %arg2: i32) -> (i32, i32) {
    %c0_i32 = arith.constant 0 : i32
    return %arg1, %arg2 : i32, i32
  }
  func.func @transform_1(%arg0: i32, %arg1: i32, %arg2: i32) -> (i32, i32) {
    %c0_i32 = arith.constant 0 : i32
    return %arg0, %arg2 : i32, i32
  }
  func.func @transform_2(%arg0: i32, %arg1: i32, %arg2: i32) -> (i32, i32) {
    %c0_i32 = arith.constant 0 : i32
    return %arg0, %arg2 : i32, i32
  }
  func.func @transform_3(%arg0: i32, %arg1: i32, %arg2: i32) -> (i32, i32) {
    %c0_i32 = arith.constant 0 : i32
    return %arg0, %arg2 : i32, i32
  }
  func.func @transform_4(%arg0: i32, %arg1: i32, %arg2: i32) -> (i32, i32) {
    %c0_i32 = arith.constant 0 : i32
    %c0_i32_0 = arith.constant 0 : i32
    return %c0_i32, %arg0 : i32, i32
  }
  func.func @transform_5(%arg0: i32, %arg1: i32, %arg2: i32) -> (i32, i32) {
    %c0_i32 = arith.constant 0 : i32
    %c0_i32_0 = arith.constant 0 : i32
    return %c0_i32, %arg0 : i32, i32
  }
  func.func @transform_6(%arg0: i32, %arg1: i32, %arg2: i32) -> (i32, i32) {
    %c0_i32 = arith.constant 0 : i32
    %c0_i32_0 = arith.constant 0 : i32
    return %c0_i32, %arg0 : i32, i32
  }
  func.func @transform_7(%arg0: i32, %arg1: i32, %arg2: i32) -> (i32, i32) {
    %c0_i32 = arith.constant 0 : i32
    return %arg1, %arg0 : i32, i32
  }
}

</mosaic_0001>

<bundles_post_ra>
// kernel: tpu_custom_call.1
= control target key start
LH: loop header
LB: loop body
LE: loop exit
PB: predicated region body
PF: predicated region fallthrough
CT: control target
= control target key end

     0   :  { %12 = vsyncpa [#allocation4], 0  ;;  %s898_s0 = inlined_call_operand.hbm [shape: f32[8,128], index: 0, kind: input, shape index: {}]   ;;  %s899_s1 = inlined_call_operand.hbm [shape: f32[128,128], index: 1, kind: input, shape index: {}]   ;;  %s900_s2 = inlined_call_operand.hbm [shape: f32[128,128], index: 2, kind: input, shape index: {}]   ;;  %s901_s3 = inlined_call_operand.hbm [shape: f32[128,128], index: 3, kind: input, shape index: {}]   ;;  %s902_s4 = inlined_call_operand.vmem [shape: f32[1,128], index: 4, kind: input, shape index: {}]   ;;  %s903_s5 = inlined_call_operand.vmem [shape: f32[1,128], index: 5, kind: input, shape index: {}]   ;;  %s904_s6 = inlined_call_operand.vmem [shape: f32[1,128], index: 6, kind: input, shape index: {}]   ;;  %s905_s7 = inlined_call_operand.hbm [shape: f32[8,128], index: 7, kind: output, shape index: {}]  }
   0x1   :  { %13 = vsyncpa [#allocation7], 0 }
   0x2   :  { %14 = vsyncpa [#allocation10], 0 }
   0x3   :  { %15 = vsyncpa [#allocation5], 0  ;;  %s698_s24 = smov [#allocation6]   ;;  %s580_s28 = scalar_lea.hbm %s899_s1, 2048 }
   0x4   :  { %s31_s25 = sshll.u32 %s698_s24, 4  ;;  %p581_p0 = scmp.ne.s32.totalorder %s899_s1, %s580_s28  ;;  %s32_s25 = int_to_ptr.vmem [resolvable:$true] %s31_s25 }
   0x5   :  { %p584_p1 = scmp.lt.u32.totalorder %s580_s28, %s899_s1 }
   0x7   :  { %p586_p2 = pnand %p584_p1, %p581_p0 }
   0x9   :  { %589 = shalt.err (!%p586_p2)
}
   0xa   :  { %s590_s10 = scalar_lea.vmem %s32_s25, 2048  ;;  %p595_p4 = scmp.lt.s32.totalorder %s32_s25, %s32_s25 }
   0xb   :  { %p591_p3 = scmp.ne.s32.totalorder %s32_s25, %s590_s10  ;;  %p596_p5 = scmp.lt.s32.totalorder %s590_s10, %s590_s10 }
   0xd   :  { %p597_p6 = por %p596_p5, %p595_p4 }
   0xf   :  { %p598_p7 = pnand %p597_p6, %p591_p3 }
  0x11   :  { %601 = shalt.err (!%p598_p7)
}
  0x12   :  { %s699_s11 = smov 128   ;;  %s700_s12 = smov 8  }
  0x13   :  { %37 = dma.hbm_to_vmem [thread:$0]  %s899_s1, 2048, %s32_s25, [#allocation7], %s699_s11, %s699_s11, %s700_s12  }
  0x14   :  { %s701_s15 = smov [#allocation3]   ;;  %s702_s17 = smov [#allocation8]  }
  0x15   :  { %s22_s16 = sshll.u32 %s701_s15, 4  ;;  %s43_s18 = sshll.u32 %s702_s17, 4  ;;  %s23_s16 = int_to_ptr.vmem [resolvable:$true] %s22_s16  ;;  %s44_s18 = int_to_ptr.vmem [resolvable:$true] %s43_s18 }
  0x16   :  { %s602_s21 = scalar_lea.hbm %s898_s0, 128 }
  0x17   :  { %p603_p8 = scmp.ne.s32.totalorder %s898_s0, %s602_s21  ;;  %p606_p9 = scmp.lt.u32.totalorder %s602_s21, %s898_s0 }
  0x19   :  { %p608_p10 = pnand %p606_p9, %p603_p8 }
  0x1b   :  { %611 = shalt.err (!%p608_p10)
}
  0x1c   :  { %s612_s1 = scalar_lea.vmem %s23_s16, 128  ;;  %p617_p12 = scmp.lt.s32.totalorder %s23_s16, %s23_s16 }
  0x1d   :  { %p613_p11 = scmp.ne.s32.totalorder %s23_s16, %s612_s1  ;;  %p618_p13 = scmp.lt.s32.totalorder %s612_s1, %s612_s1 }
  0x1f   :  { %p619_p0 = por %p618_p13, %p617_p12 }
  0x21   :  { %p620_p1 = pnand %p619_p0, %p613_p11 }
  0x23   :  { %623 = shalt.err (!%p620_p1)
}
  0x24   :  { %25 = dma.hbm_to_vmem [thread:$0]  %s898_s0, 128, %s23_s16, [#allocation4]  }
  0x25   :  { %s624_s30 = scalar_lea.hbm %s900_s2, 2048 }
  0x26   :  { %p625_p2 = scmp.ne.s32.totalorder %s900_s2, %s624_s30  ;;  %p628_p3 = scmp.lt.u32.totalorder %s624_s30, %s900_s2 }
  0x28   :  { %p630_p4 = pnand %p628_p3, %p625_p2 }
  0x2a   :  { %633 = shalt.err (!%p630_p4)
}
  0x2b   :  { %s634_s14 = scalar_lea.vmem %s44_s18, 2048  ;;  %p639_p6 = scmp.lt.s32.totalorder %s44_s18, %s44_s18 }
  0x2c   :  { %p635_p5 = scmp.ne.s32.totalorder %s44_s18, %s634_s14  ;;  %p640_p7 = scmp.lt.s32.totalorder %s634_s14, %s634_s14 }
  0x2e   :  { %p641_p8 = por %p640_p7, %p639_p6 }
  0x30   :  { %p642_p9 = pnand %p641_p8, %p635_p5 }
  0x32   :  { %645 = shalt.err (!%p642_p9)
}
  0x33   :  { %49 = dma.hbm_to_vmem [thread:$0]  %s900_s2, 2048, %s44_s18, [#allocation7], %s699_s11, %s699_s11, %s700_s12  }
  0x34   :  { %s703_s16 = smov [#allocation9]   ;;  %s646_s21 = scalar_lea.hbm %s901_s3, 2048 }
  0x35   :  { %s55_s17 = sshll.u32 %s703_s16, 4  ;;  %p647_p10 = scmp.ne.s32.totalorder %s901_s3, %s646_s21  ;;  %s56_s17 = int_to_ptr.vmem [resolvable:$true] %s55_s17 }
  0x36   :  { %p650_p11 = scmp.lt.u32.totalorder %s646_s21, %s901_s3 }
  0x38   :  { %p652_p12 = pnand %p650_p11, %p647_p10 }
  0x3a   :  { %655 = shalt.err (!%p652_p12)
}
  0x3b   :  { %s656_s1 = scalar_lea.vmem %s56_s17, 2048  ;;  %p661_p0 = scmp.lt.s32.totalorder %s56_s17, %s56_s17 }
  0x3c   :  { %p657_p13 = scmp.ne.s32.totalorder %s56_s17, %s656_s1  ;;  %p662_p1 = scmp.lt.s32.totalorder %s656_s1, %s656_s1 }
  0x3e   :  { %p663_p2 = por %p662_p1, %p661_p0 }
  0x40   :  { %p664_p3 = pnand %p663_p2, %p657_p13 }
  0x42   :  { %667 = shalt.err (!%p664_p3)
}
  0x43   :  { %61 = dma.hbm_to_vmem [thread:$0]  %s901_s3, 2048, %s56_s17, [#allocation10], %s699_s11, %s699_s11, %s700_s12  }
  0x44   :  { %690 = dma.done.wait [#allocation4], 128  }
  0x45   :  { %691 = vsyncadd [#allocation4], 4294967168 }
  0x46   :  { %692 = dma.done.wait [#allocation7], 4096  }
  0x47   :  { %693 = vsyncadd [#allocation7], 4294963200 }
  0x48   :  { %694 = dma.done.wait [#allocation10], 2048  }
  0x49   :  { %695 = vsyncadd [#allocation10], 4294965248  ;;  %v704_v0 = vmov 0.0|0.0   ;;  %vm705_vm0 = vmmov 0   ;;  %v706_v1 = vmov 0.0   ;;  %v806_v2 = vld [vmem:[#allocation8] sm:$0xff] }
  0x4a   :  { %478 = vmatprep.subr.bf16.mxu0 %v704_v0  ;;  %475 = vmatprep.mubr.msk.f32.mxu0 %vm705_vm0, %v706_v1  ;;  %v808_v3 = vld [vmem:[#allocation8 + $0x8] sm:$0xff]  ;;  %v133_v4 = vand.u32 2147483647, %v806_v2  ;;  %v812_v6 = vld [vmem:[#allocation8 + $0x10] sm:$0xff]  ;;  %v814_v8 = vld [vmem:[#allocation8 + $0x18] sm:$0xff]  ;;  %s707_s28 = smov [#allocation11]  }
  0x4b   :  { %v134_v5 = vand.u32 2147483647, %v808_v3  ;;  %v135_v9 = vand.u32 2147483647, %v812_v6  ;;  %v136_v11 = vand.u32 2147483647, %v814_v8 }
  0x4c   :  { %v149_v7 = vsub.f32 0.0, %v133_v4  ;;  %v818_v14 = vld [vmem:[#allocation8 + $0x20] sm:$0xff]  ;;  %v820_v15 = vld [vmem:[#allocation8 + $0x28] sm:$0xff]  ;;  %v824_v24 = vld [vmem:[#allocation8 + $0x30] sm:$0xff]  ;;  %s415_s29 = sshll.u32 %s707_s28, 4  ;;  %s416_s29 = int_to_ptr.vmem [resolvable:$true] %s415_s29 }
  0x4d   :  { %v150_v10 = vsub.f32 0.0, %v134_v5  ;;  %v151_v13 = vsub.f32 0.0, %v135_v9  ;;  %v152_v17 = vsub.f32 0.0, %v136_v11  ;;  %v137_v19 = vand.u32 2147483647, %v818_v14  ;;  %v826_v25 = vld [vmem:[#allocation8 + $0x38] sm:$0xff]  ;;  %p673_p5 = scmp.lt.s32.totalorder %s416_s29, %s416_s29 }
  0x4e   :  { %v165_v12 = vmul.f32 1.442695, %v149_v7  ;;  %v138_v20 = vand.u32 2147483647, %v820_v15  ;;  %v139_v26 = vand.u32 2147483647, %v824_v24 }
  0x4f   :  { %v167_v16 = vmul.f32 1.442695, %v150_v10  ;;  %v169_v18 = vmul.f32 1.442695, %v151_v13  ;;  %v171_v21 = vmul.f32 1.442695, %v152_v17 }
  0x50   :  { %512 = vpow2.f32 %v165_v12  ;;  %v153_v22 = vsub.f32 0.0, %v137_v19  ;;  %v154_v23 = vsub.f32 0.0, %v138_v20  ;;  %v140_v29 = vand.u32 2147483647, %v826_v25  ;;  %v830_v31 = vld [vmem:[#allocation8 + $0x40] sm:$0xff]  ;;  %v832_v32 = vld [vmem:[#allocation8 + $0x48] sm:$0xff] }
  0x51   :  { %514 = vpow2.f32 %v167_v16  ;;  %v155_v30 = vsub.f32 0.0, %v139_v26  ;;  %v141_v35 = vand.u32 2147483647, %v830_v31  ;;  %v142_v36 = vand.u32 2147483647, %v832_v32  ;;  %v836_v38 = vld [vmem:[#allocation8 + $0x50] sm:$0xff] }
  0x52   :  { %516 = vpow2.f32 %v169_v18  ;;  %v173_v27 = vmul.f32 1.442695, %v153_v22  ;;  %v175_v28 = vmul.f32 1.442695, %v154_v23  ;;  %v156_v33 = vsub.f32 0.0, %v140_v29  ;;  %v838_v42 = vld [vmem:[#allocation8 + $0x58] sm:$0xff] }
  0x53   :  { %518 = vpow2.f32 %v171_v21  ;;  %v177_v34 = vmul.f32 1.442695, %v155_v30  ;;  %v157_v39 = vsub.f32 0.0, %v141_v35  ;;  %v158_v41 = vsub.f32 0.0, %v142_v36  ;;  %v842_v55 = vld [vmem:[#allocation8 + $0x60] sm:$0xff]  ;;  %v844_v60 = vld [vmem:[#allocation8 + $0x68] sm:$0xff] }
  0x54   :  { %520 = vpow2.f32 %v173_v27  ;;  %v179_v37 = vmul.f32 1.442695, %v156_v33  ;;  %v143_v45 = vand.u32 2147483647, %v836_v38  ;;  %v144_v51 = vand.u32 2147483647, %v838_v42 }
  0x55   :  { %522 = vpow2.f32 %v175_v28  ;;  %v181_v50 = vmul.f32 1.442695, %v157_v39  ;;  %v183_v53 = vmul.f32 1.442695, %v158_v41  ;;  %v145_v62 = vand.u32 2147483647, %v842_v55 }
  0x56   :  { %524 = vpow2.f32 %v177_v34  ;;  %v159_v54 = vsub.f32 0.0, %v143_v45  ;;  %v160_v59 = vsub.f32 0.0, %v144_v51  ;;  %v146_v7 = vand.u32 2147483647, %v844_v60  ;;  %v849_v13 = vld [vmem:[#allocation8 + $0x70] sm:$0xff]  ;;  %v261_v20 = vld [vmem:[#allocation9] sm:$0xff] }
  0x57   :  { %526 = vpow2.f32 %v179_v37  ;;  %v117_v10 = vmax.f32 %v806_v2, 0.0  ;;  %v161_v12 = vsub.f32 0.0, %v145_v62  ;;  %v118_v17 = vmax.f32 %v808_v3, 0.0  ;;  %v854_v2 = vld [vmem:[#allocation8 + $0x78] sm:$0xff]  ;;  %v262_v3 = vld [vmem:[#allocation9 + $0x8] sm:$0xff]  ;;  %v85_v36 = vld [vmem:[#allocation6] sm:$0xff] }
  0x58   :  { %v185_v1 = vmul.f32 1.442695, %v159_v54  ;;  %v187_v9 = vmul.f32 1.442695, %v160_v59  ;;  %v119_v21 = vmax.f32 %v812_v6, 0.0  ;;  %v162_v22 = vsub.f32 0.0, %v146_v7 }
  0x59   :  { %v120_v27 = vmax.f32 %v814_v8, 0.0  ;;  %v147_v28 = vand.u32 2147483647, %v849_v13  ;;  %v189_v34 = vmul.f32 1.442695, %v161_v12  ;;  %v263_v39 = vld [vmem:[#allocation9 + $0x10] sm:$0xff] }
  0x5a   :  { %v513_v40 = vpop.eup %512  ;;  %v122_v8 = vmax.f32 %v820_v15, 0.0  ;;  %v87_v62 = vld [vmem:[#allocation6 + $0x10] sm:$0xff]  ;;  %s668_s30 = scalar_lea.vmem %s416_s29, 128 }
  0x5b   :  { %v515_v43 = vpop.eup %514  ;;  %v197_v44 = vadd.f32 1.0, %v513_v40  ;;  %v121_v40 = vmax.f32 %v818_v14, 0.0  ;;  %p669_p4 = scmp.ne.s32.totalorder %s416_s29, %s668_s30  ;;  %p674_p6 = scmp.lt.s32.totalorder %s668_s30, %s668_s30 }
  0x5c   :  { %v517_v46 = vpop.eup %516  ;;  %v198_v47 = vadd.f32 1.0, %v515_v43  ;;  %v86_v43 = vld [vmem:[#allocation6 + $0x8] sm:$0xff] }
  0x5d   :  { %v519_v48 = vpop.eup %518  ;;  %528 = vlog2.f32 %v197_v44  ;;  %v199_v49 = vadd.f32 1.0, %v517_v46  ;;  %v264_v46 = vld [vmem:[#allocation9 + $0x18] sm:$0xff]  ;;  %p675_p7 = por %p674_p6, %p673_p5 }
  0x5e   :  { %530 = vlog2.f32 %v198_v47  ;;  %v200_v52 = vadd.f32 1.0, %v519_v48  ;;  %v521_v56 = vpop.eup %520  ;;  %v191_v47 = vmul.f32 1.442695, %v162_v22  ;;  %v148_v48 = vand.u32 2147483647, %v854_v2 }
  0x5f   :  { %532 = vlog2.f32 %v199_v49  ;;  %v523_v57 = vpop.eup %522  ;;  %v201_v58 = vadd.f32 1.0, %v521_v56  ;;  %v123_v22 = vmax.f32 %v824_v24, 0.0  ;;  %p676_p8 = pnand %p675_p7, %p669_p4 }
  0x60   :  { %534 = vlog2.f32 %v200_v52  ;;  %v202_v61 = vadd.f32 1.0, %v523_v57  ;;  %v525_v63 = vpop.eup %524 }
  0x61   :  { %536 = vpow2.f32 %v181_v50  ;;  %v527_v4 = vpop.eup %526  ;;  %v203_v5 = vadd.f32 1.0, %v525_v63  ;;  %v88_v63 = vld [vmem:[#allocation6 + $0x18] sm:$0xff] }
  0x62   :  { %538 = vpow2.f32 %v183_v53  ;;  %v204_v11 = vadd.f32 1.0, %v527_v4  ;;  %v163_v53 = vsub.f32 0.0, %v147_v28 }
  0x63   :  { %540 = vlog2.f32 %v201_v58 }
  0x64   :  { %542 = vlog2.f32 %v202_v61 }
  0x65   :  { %544 = vpow2.f32 %v185_v1  ;;  %v164_v1 = vsub.f32 0.0, %v148_v48 }
  0x66   :  { %546 = vlog2.f32 %v203_v5 }
  0x67   :  { %v529_v16 = vpop.eup %528  ;;  %548 = vpow2.f32 %v187_v9  ;;  %v193_v9 = vmul.f32 1.442695, %v163_v53 }
  0x68   :  { %v531_v18 = vpop.eup %530  ;;  %v214_v19 = vmul.f32 0.6931472, %v529_v16  ;;  %550 = vlog2.f32 %v204_v11 }
  0x69   :  { %v533_v23 = vpop.eup %532  ;;  %v216_v26 = vmul.f32 0.6931472, %v531_v18  ;;  %552 = vpow2.f32 %v189_v34 }
  0x6a   :  { %v535_v29 = vpop.eup %534  ;;  %v245_v30 = vadd.f32 %v214_v19, %v117_v10  ;;  %v218_v33 = vmul.f32 0.6931472, %v533_v23  ;;  %554 = vpow2.f32 %v191_v47  ;;  %v265_v19 = vld [vmem:[#allocation9 + $0x20] sm:$0xff]  ;;  %v126_v47 = vmax.f32 %v832_v32, 0.0 }
  0x6b   :  { %v537_v35 = vpop.eup %536  ;;  %v246_v6 = vadd.f32 %v216_v26, %v118_v17  ;;  %v220_v37 = vmul.f32 0.6931472, %v535_v29  ;;  %v124_v26 = vmax.f32 %v826_v25, 0.0  ;;  %v269_v32 = vld [vmem:[#allocation9 + $0x40] sm:$0xff] }
  0x6c   :  { %v539_v41 = vpop.eup %538  ;;  %v277_v44 = vmul.f32 %v261_v20, %v245_v30  ;;  %v247_v45 = vadd.f32 %v218_v33, %v119_v21  ;;  %v205_v52 = vadd.f32 1.0, %v537_v35  ;;  %v266_v20 = vld [vmem:[#allocation9 + $0x28] sm:$0xff]  ;;  %v195_v21 = vmul.f32 1.442695, %v164_v1  ;;  %v89_v35 = vld [vmem:[#allocation6 + $0x20] sm:$0xff] }
  0x6d   :  { %v541_v49 = vpop.eup %540  ;;  %v278_v50 = vmul.f32 %v262_v3, %v246_v6  ;;  %v248_v51 = vadd.f32 %v220_v37, %v120_v27  ;;  %v206_v58 = vadd.f32 1.0, %v539_v41  ;;  %v127_v1 = vmax.f32 %v836_v38, 0.0 }
  0x6e   :  { %v543_v54 = vpop.eup %542  ;;  %v293_v56 = vadd.f32 %v277_v44, %v85_v36  ;;  %v279_v57 = vmul.f32 %v263_v39, %v247_v45  ;;  %v222_v59 = vmul.f32 0.6931472, %v541_v49  ;;  %556 = vlog2.f32 %v205_v52  ;;  %v90_v36 = vld [vmem:[#allocation6 + $0x28] sm:$0xff] }
  0x6f   :  { %v294_v14 = vadd.f32 %v278_v50, %v86_v43  ;;  %v280_v15 = vmul.f32 %v264_v46, %v248_v51  ;;  %v224_v61 = vmul.f32 0.6931472, %v543_v54  ;;  %v545_v4 = vpop.eup %544  ;;  %558 = vlog2.f32 %v206_v58  ;;  %v268_v43 = vld [vmem:[#allocation9 + $0x38] sm:$0xff]  ;;  %v91_v54 = vld [vmem:[#allocation6 + $0x30] sm:$0xff] }
  0x70   :  { %v547_v7 = vpop.eup %546  ;;  %v295_v11 = vadd.f32 %v279_v57, %v87_v62  ;;  %v249_v16 = vadd.f32 %v222_v59, %v121_v40  ;;  %v207_v23 = vadd.f32 1.0, %v545_v4  ;;  %560 = vpow2.f32 %v193_v9  ;;  %v270_v62 = vld [vmem:[#allocation9 + $0x48] sm:$0xff] }
  0x71   :  { %v479_v5 = vpack.c.bf16 %v294_v14, %v293_v56  ;;  %v549_v10 = vpop.eup %548  ;;  %v296_v12 = vadd.f32 %v280_v15, %v88_v63  ;;  %v250_v17 = vadd.f32 %v224_v61, %v122_v8  ;;  %v226_v27 = vmul.f32 0.6931472, %v547_v7  ;;  %v267_v8 = vld [vmem:[#allocation9 + $0x30] sm:$0xff]  ;;  %v92_v56 = vld [vmem:[#allocation6 + $0x38] sm:$0xff] }
  0x72   :  { %v551_v18 = vpop.eup %550  ;;  %v208_v28 = vadd.f32 1.0, %v549_v10  ;;  %v281_v30 = vmul.f32 %v265_v19, %v249_v16  ;;  %562 = vpow2.f32 %v195_v21  ;;  %v125_v46 = vmax.f32 %v830_v31, 0.0  ;;  %v93_v16 = vld [vmem:[#allocation6 + $0x40] sm:$0xff] }
  0x73   :  { %480 = vmatpush3.bf16.xpose.msra.mxu0 %v479_v5  ;;  %v482_v29 = vpack.c.bf16 %v296_v12, %v295_v11  ;;  %v282_v3 = vmul.f32 %v266_v20, %v250_v17  ;;  %v228_v33 = vmul.f32 0.6931472, %v551_v18  ;;  %v553_v34 = vpop.eup %552  ;;  %564 = vlog2.f32 %v207_v23  ;;  %v94_v17 = vld [vmem:[#allocation6 + $0x48] sm:$0xff]  ;;  %v271_v23 = vld [vmem:[#allocation9 + $0x50] sm:$0xff] }
  0x74   :  { %481 = vmatprep.subr.bf16.mxu0 %v704_v0  ;;  %v555_v6 = vpop.eup %554  ;;  %v251_v37 = vadd.f32 %v226_v27, %v123_v22  ;;  %566 = vlog2.f32 %v208_v28  ;;  %v297_v24 = vadd.f32 %v281_v30, %v89_v35  ;;  %v209_v44 = vadd.f32 1.0, %v553_v34  ;;  %v95_v34 = vld [vmem:[#allocation6 + $0x50] sm:$0xff]  ;;  %v96_v35 = vld [vmem:[#allocation6 + $0x58] sm:$0xff] }
  0x75   :  { %v298_v40 = vadd.f32 %v282_v3, %v90_v36  ;;  %v252_v25 = vadd.f32 %v228_v33, %v124_v26  ;;  %v210_v48 = vadd.f32 1.0, %v555_v6  ;;  %v128_v4 = vmax.f32 %v838_v42, 0.0  ;;  %v272_v42 = vld [vmem:[#allocation9 + $0x58] sm:$0xff] }
  0x76   :  { %v283_v45 = vmul.f32 %v267_v8, %v251_v37  ;;  %568 = vlog2.f32 %v209_v44  ;;  %v129_v27 = vmax.f32 %v842_v55, 0.0  ;;  %v130_v28 = vmax.f32 %v844_v60, 0.0  ;;  %v274_v8 = vld [vmem:[#allocation9 + $0x68] sm:$0xff] }
  0x77   :  { %v485_v49 = vpack.c.bf16 %v298_v40, %v297_v24  ;;  %v284_v50 = vmul.f32 %v268_v43, %v252_v25  ;;  %570 = vlog2.f32 %v210_v48  ;;  %v273_v25 = vld [vmem:[#allocation9 + $0x60] sm:$0xff]  ;;  %v131_v55 = vmax.f32 %v849_v13, 0.0  ;;  %v98_v48 = vld [vmem:[#allocation6 + $0x68] sm:$0xff] }
  0x78   :  { %v557_v39 = vpop.eup %556  ;;  %v299_v14 = vadd.f32 %v283_v45, %v91_v54  ;;  %v132_v60 = vmax.f32 %v854_v2, 0.0  ;;  %v276_v54 = vld [vmem:[#allocation9 + $0x78] sm:$0xff]  ;;  %v99_v2 = vld [vmem:[#allocation6 + $0x70] sm:$0xff] }
  0x79   :  { %v559_v41 = vpop.eup %558  ;;  %v230_v51 = vmul.f32 0.6931472, %v557_v39  ;;  %v300_v15 = vadd.f32 %v284_v50, %v92_v56 }
  0x7a   :  { %v232_v52 = vmul.f32 0.6931472, %v559_v41  ;;  %v561_v53 = vpop.eup %560 }
  0x7b   :  { %483 = vmatpush3.bf16.xpose.msra.mxu0 %v482_v29  ;;  %v253_v59 = vadd.f32 %v230_v51, %v125_v46  ;;  %v211_v63 = vadd.f32 1.0, %v561_v53  ;;  %v488_v9 = vpack.c.bf16 %v300_v15, %v299_v14  ;;  %v275_v53 = vld [vmem:[#allocation9 + $0x70] sm:$0xff] }
  0x7c   :  { %484 = vmatprep.subr.bf16.mxu0 %v704_v0  ;;  %v563_v57 = vpop.eup %562  ;;  %v254_v61 = vadd.f32 %v232_v52, %v126_v47  ;;  %v97_v47 = vld [vmem:[#allocation6 + $0x60] sm:$0xff] }
  0x7d   :  { %v565_v58 = vpop.eup %564  ;;  %v212_v7 = vadd.f32 1.0, %v563_v57  ;;  %v285_v10 = vmul.f32 %v269_v32, %v253_v59  ;;  %572 = vlog2.f32 %v211_v63 }
  0x7e   :  { %v567_v31 = vpop.eup %566  ;;  %v234_v5 = vmul.f32 0.6931472, %v565_v58  ;;  %v286_v11 = vmul.f32 %v270_v62, %v254_v61  ;;  %v100_v58 = vld [vmem:[#allocation6 + $0x78] sm:$0xff] }
  0x7f   :  { %v236_v12 = vmul.f32 0.6931472, %v567_v31  ;;  %574 = vlog2.f32 %v212_v7  ;;  %v301_v20 = vadd.f32 %v285_v10, %v93_v16  ;;  %v310_v61 = vld [vmem:[#allocation3] sm:$0xff] }
  0x80   :  { %v255_v18 = vadd.f32 %v234_v5, %v127_v1  ;;  %v569_v19 = vpop.eup %568  ;;  %v302_v21 = vadd.f32 %v286_v11, %v94_v17  ;;  %v387_v31 = vld [vmem:[%s903_s5] sm:$0x1] }
  0x81   :  { %v256_v22 = vadd.f32 %v236_v12, %v128_v4  ;;  %v571_v38 = vpop.eup %570  ;;  %v238_v3 = vmul.f32 0.6931472, %v569_v19  ;;  %v389_v32 = vand.u32 2147483647, %v387_v31  ;;  %v388_v7 = vmax.f32 %v387_v31, 0.0 }
  0x82   :  { %v287_v26 = vmul.f32 %v271_v23, %v255_v18  ;;  %v491_v29 = vpack.c.bf16 %v302_v21, %v301_v20  ;;  %v240_v33 = vmul.f32 0.6931472, %v571_v38  ;;  %v397_v11 = vld [vmem:[%s904_s6] sm:$0x1] }
  0x83   :  { %486 = vmatpush3.bf16.xpose.msra.mxu0 %v485_v49  ;;  %v288_v30 = vmul.f32 %v272_v42, %v256_v22  ;;  %v257_v39 = vadd.f32 %v238_v3, %v129_v27  ;;  %v390_v62 = vsub.f32 0.0, %v389_v32  ;;  %v386_v17 = vld [vmem:[%s902_s4] sm:$0x1] }
  0x84   :  { %487 = vmatprep.subr.bf16.mxu0 %v704_v0  ;;  %v303_v6 = vadd.f32 %v287_v26, %v95_v34  ;;  %v258_v24 = vadd.f32 %v240_v33, %v130_v28 }
  0x85   :  { %v304_v37 = vadd.f32 %v288_v30, %v96_v35  ;;  %v289_v44 = vmul.f32 %v273_v25, %v257_v39  ;;  %v391_v63 = vmul.f32 1.442695, %v390_v62 }
  0x86   :  { %v290_v45 = vmul.f32 %v274_v8, %v258_v24 }
  0x87   :  { %v573_v36 = vpop.eup %572  ;;  %v494_v43 = vpack.c.bf16 %v304_v37, %v303_v6  ;;  %v305_v49 = vadd.f32 %v289_v44, %v97_v47  ;;  %576 = vpow2.f32 %v391_v63 }
  0x88   :  { %v242_v41 = vmul.f32 0.6931472, %v573_v36  ;;  %v306_v50 = vadd.f32 %v290_v45, %v98_v48 }
  0x89   :  { %v575_v40 = vpop.eup %574 }
  0x8a   :  { %v244_v46 = vmul.f32 0.6931472, %v575_v40  ;;  %v259_v51 = vadd.f32 %v242_v41, %v131_v55  ;;  %v497_v56 = vpack.c.bf16 %v306_v50, %v305_v49 }
  0x8b   :  { %489 = vmatpush3.bf16.xpose.msra.mxu0 %v488_v9 }
  0x8c   :  { %490 = vmatprep.subr.bf16.mxu0 %v704_v0  ;;  %v260_v52 = vadd.f32 %v244_v46, %v132_v60  ;;  %v291_v13 = vmul.f32 %v275_v53, %v259_v51 }
  0x8e   :  { %v292_v57 = vmul.f32 %v276_v54, %v260_v52  ;;  %v307_v14 = vadd.f32 %v291_v13, %v99_v2 }
  0x90   :  { %v308_v15 = vadd.f32 %v292_v57, %v100_v58 }
  0x91   :  { %v577_v1 = vpop.eup %576 }
  0x92   :  { %v500_v59 = vpack.c.bf16 %v308_v15, %v307_v14  ;;  %v393_v4 = vadd.f32 1.0, %v577_v1 }
  0x93   :  { %492 = vmatpush3.bf16.xpose.msra.mxu0 %v491_v29 }
  0x94   :  { %493 = vmatprep.subr.bf16.mxu0 %v704_v0  ;;  %578 = vlog2.f32 %v393_v4 }
  0x9b   :  { %495 = vmatpush3.bf16.xpose.msra.mxu0 %v494_v43 }
  0x9c   :  { %496 = vmatprep.subr.bf16.mxu0 %v704_v0 }
  0x9e   :  { %v579_v5 = vpop.eup %578 }
  0x9f   :  { %v395_v9 = vmul.f32 0.6931472, %v579_v5 }
  0xa1   :  { %v396_v10 = vadd.f32 %v395_v9, %v388_v7 }
  0xa3   :  { %498 = vmatpush3.bf16.xpose.msra.mxu0 %v497_v56  ;;  %v398_v12 = vmul.f32 %v397_v11, %v396_v10 }
  0xa4   :  { %499 = vmatprep.subr.bf16.mxu0 %v704_v0  ;;  %v402_v0 = vlaneseq }
  0xa5   :  { %v399_v18 = vadd.f32 %v398_v12, %v386_v17 }
  0xa6   :  { %v403_v16 = vshrl.u32 %v402_v0, 7 }
  0xa8   :  { %v404_v19 = vsub.s32 0, %v403_v16 }
  0xaa   :  { %v405_v20 = vrot.slane %v399_v18, %v404_v19 }
  0xab   :  { %501 = vmatpush3.bf16.xpose.msra.mxu0 %v500_v59 }
  0xb2   :  { %476 = vmatmul.mubr.f32.vlgmr.msra.gmra.mrb[0].mxu0 %v310_v61 }
 0x185   :  { %v377_v21 = vpop.f32.mrb[0].mxu0 }
 0x186   :  { %v407_v22 = vadd.f32 %v405_v20, %v377_v21  ;;  %v477_v23 = vpop.f32.mrb[1].mxu0 }
 0x188   :  { %408 = vst [vmem:[#allocation11] sm:$0xff] %v407_v22 }
 0x189   :  { %679 = shalt.err (!%p676_p8)
}
 0x18a   :  { %s680_s4 = scalar_lea.hbm %s905_s7, 128 }
 0x18b   :  { %p681_p9 = scmp.ne.s32.totalorder %s905_s7, %s680_s4  ;;  %p684_p10 = scmp.lt.u32.totalorder %s680_s4, %s905_s7 }
 0x18d   :  { %p686_p11 = pnand %p684_p10, %p681_p9 }
 0x18f   :  { %689 = shalt.err (!%p686_p11)
}
 0x190   :  { %418 = dma.vmem_to_hbm [thread:$0]  %s416_s29, 128, %s905_s7, [#allocation5]  }
 0x191   :  { %696 = dma.done.wait [#allocation5], 128  }
 0x192   :  { %697 = vsyncadd [#allocation5], 4294967168 }
 0x193   :  { %422 = vsyncpa [#allocation4], 1 }
 0x194   :  { %423 = vsyncpa [#allocation7], 1 }
 0x195   :  { %424 = vsyncpa [#allocation10], 1 }
 0x196   :  { %425 = vsyncpa [#allocation5], 1 }

</bundles_post_ra>
